<compile_context>
chip_gen: v7x
topology: tpu7x:2x2x1
jax: 0.10.0
libtpu: 0.0.40
codegen_flags: <defaults>
</compile_context>

<pallas_src>
import functools

import jax
import jax.numpy as jnp
from jax.experimental import pallas as pl
from jax.experimental.pallas import tpu as pltpu

# ------------------------------ model config --------------------------------
BATCH = 2
INPUT_DIM = 32
HIDDEN_DIM = 64
NUM_CLASSES = 16

# ---------------------------- padded layout ----------------------------------
LANE = 128
D_IN_P = 128     # INPUT_DIM   (32)  -> 128 lanes
D_HID_P = 128    # HIDDEN_DIM  (64)  -> 128 lanes
D_OUT_P = 128    # NUM_CLASSES (16)  -> 128 lanes (lane-dense output stores)

# Row offsets inside the packed parameter slab.  Every segment starts on an
# 8-row (sublane-tile) boundary; bias segments are 8 rows with only row 0 used.
W1_ROW = 0
B1_ROW = W1_ROW + D_IN_P          # 128
W2_ROW = B1_ROW + 8               # 136
B2_ROW = W2_ROW + D_HID_P         # 264
W3_ROW = B2_ROW + 8               # 272
B3_ROW = W3_ROW + D_HID_P         # 400
P_ROWS = B3_ROW + 8               # 408 rows x 128 lanes x 4 B ~= 204 KiB


# -------------------------------- kernel ------------------------------------
def _mlp_fused_kernel(x_ref, p_ref, o_ref):
    """out = relu(relu(x@W1+b1)@W2+b2)@W3 + b3, one VMEM-resident pass per tile."""
    x = x_ref[...]                                     # (TB, 128) f32, zero-padded

    w1 = p_ref[pl.ds(W1_ROW, D_IN_P), :]               # (128, 128)
    b1 = p_ref[pl.ds(B1_ROW, 1), :]                    # (1, 128)
    w2 = p_ref[pl.ds(W2_ROW, D_HID_P), :]              # (128, 128)
    b2 = p_ref[pl.ds(B2_ROW, 1), :]                    # (1, 128)
    w3 = p_ref[pl.ds(W3_ROW, D_HID_P), :]              # (128, 128)
    b3 = p_ref[pl.ds(B3_ROW, 1), :]                    # (1, 128)

    h = jnp.dot(x, w1, preferred_element_type=jnp.float32) + b1
    h = jnp.maximum(h, 0.0)                            # ReLU (VPU)

    h = jnp.dot(h, w2, preferred_element_type=jnp.float32) + b2
    h = jnp.maximum(h, 0.0)                            # ReLU (VPU)

    out = jnp.dot(h, w3, preferred_element_type=jnp.float32) + b3
    o_ref[...] = out.astype(o_ref.dtype)               # (TB, 128) lane-dense store


# ----------------------------- param packing ---------------------------------
def pack_params(w1, b1, w2, b2, w3, b3):
    """Pack (in,out)-layout weights + biases into one lane-padded f32 slab.

    NOTE: PyTorch nn.Linear stores weight as (out, in); a real checkpoint would
    be transposed before packing.  Padded rows/cols are zero, which keeps the
    padded computation exact (zeros contribute nothing, ReLU(0)=0).
    """
    slab = jnp.zeros((P_ROWS, LANE), jnp.float32)
    slab = slab.at[W1_ROW:W1_ROW + w1.shape[0], :w1.shape[1]].set(w1)
    slab = slab.at[B1_ROW, :b1.shape[0]].set(b1)
    slab = slab.at[W2_ROW:W2_ROW + w2.shape[0], :w2.shape[1]].set(w2)
    slab = slab.at[B2_ROW, :b2.shape[0]].set(b2)
    slab = slab.at[W3_ROW:W3_ROW + w3.shape[0], :w3.shape[1]].set(w3)
    slab = slab.at[B3_ROW, :b3.shape[0]].set(b3)
    return slab


# ------------------------------- wrapper -------------------------------------
def _make_cost_estimate(b_pad):
    flops = 2 * b_pad * (D_IN_P * D_HID_P + D_HID_P * D_HID_P + D_HID_P * D_OUT_P)
    bytes_accessed = 4 * (b_pad * D_IN_P + P_ROWS * LANE + b_pad * D_OUT_P)
    return pl.CostEstimate(flops=flops, transcendentals=0,
                           bytes_accessed=bytes_accessed)


@functools.partial(jax.jit, static_argnames=("input_dim", "num_classes"))
def mlp_classifier_forward(packed_params, x, *, input_dim=INPUT_DIM,
                           num_classes=NUM_CLASSES):
    """x: (batch, input_dim) f32 -> (batch, num_classes) f32."""
    batch = x.shape[0]
    # Batch tile: fill the MXU row dimension when batched; minimum 8 rows so a
    # tiny batch still occupies a full sublane tile instead of a masked layout.
    tb = 128 if batch >= 128 else 8
    b_pad = pl.cdiv(batch, tb) * tb

    x_p = jnp.zeros((b_pad, D_IN_P), jnp.float32)
    x_p = x_p.at[:batch, :input_dim].set(x.astype(jnp.float32))

    out_p = pl.pallas_call(
        _mlp_fused_kernel,
        out_shape=jax.ShapeDtypeStruct((b_pad, D_OUT_P), jnp.float32),
        grid=(b_pad // tb,),
        in_specs=[
            pl.BlockSpec((tb, D_IN_P), lambda i: (i, 0)),       # x tile, pipelined
            pl.BlockSpec((P_ROWS, LANE), lambda i: (0, 0)),     # params, VMEM-resident
        ],
        out_specs=pl.BlockSpec((tb, D_OUT_P), lambda i: (i, 0)),  # lane-dense logits
        compiler_params=pltpu.CompilerParams(
            dimension_semantics=("parallel",)),                 # both TCs on v7x
        cost_estimate=_make_cost_estimate(b_pad),
    )(x_p, packed_params)

    return out_p[:batch, :num_classes]


# ---------------------------- params / reference -----------------------------
def init_raw_params(key):
    """Random (in, out)-layout weights and biases, f32 (PyTorch default dtype)."""
    ks = jax.random.split(key, 6)
    n = lambda k, shape: (0.02 * jax.random.normal(k, shape)).astype(jnp.float32)
    return {
        "w1": n(ks[0], (INPUT_DIM, HIDDEN_DIM)),
        "b1": n(ks[1], (HIDDEN_DIM,)),
        "w2": n(ks[2], (HIDDEN_DIM, HIDDEN_DIM)),
        "b2": n(ks[3], (HIDDEN_DIM,)),
        "w3": n(ks[4], (HIDDEN_DIM, NUM_CLASSES)),
        "b3": n(ks[5], (NUM_CLASSES,)),
    }


def mlp_reference(p, x):
    """Pure-JAX reference for correctness checking."""
    h = jnp.maximum(x @ p["w1"] + p["b1"], 0.0)
    h = jnp.maximum(h @ p["w2"] + p["b2"], 0.0)
    return h @ p["w3"] + p["b3"]


# --------------------------------- main --------------------------------------
if __name__ == "__main__":
    key = jax.random.PRNGKey(0)
    k_param, k_x = jax.random.split(key)

    raw = init_raw_params(k_param)
    packed = pack_params(raw["w1"], raw["b1"], raw["w2"], raw["b2"],
                         raw["w3"], raw["b3"])
    x = jax.random.normal(k_x, (BATCH, INPUT_DIM), dtype=jnp.float32)

    out = mlp_classifier_forward(packed, x)
    out = jax.block_until_ready(out)

    assert out.shape == (BATCH, NUM_CLASSES), out.shape
    assert bool(jnp.all(jnp.isfinite(out)))

    ref = mlp_reference(raw, x)
    assert jnp.allclose(out, ref, atol=1e-5, rtol=1e-5), (
        float(jnp.max(jnp.abs(out - ref))))

    print("KERNEL_OK")
</pallas_src>

<mosaic_0001>
module attributes {stable_mosaic.version = 11 : i64} {
  func.func @_mlp_fused_kernel(%arg0: i32, %arg1: memref<8x128xf32, #tpu.memory_space<vmem>>, %arg2: memref<408x128xf32, #tpu.memory_space<vmem>>, %arg3: memref<8x128xf32, #tpu.memory_space<vmem>>) attributes {dimension_semantics = [#tpu.dimension_semantics<parallel>], iteration_bounds = array<i64: 1>, scalar_prefetch = 0 : i64, scratch_operands = 0 : i64, tpu.core_type = #tpu.core_type<tc>, window_params = [{transform_indices = @transform_0, window_bounds = array<i64: 8, 128>}, {pipeline_mode = #tpu.pipeline_mode<synchronous>, transform_indices = @transform_1, window_bounds = array<i64: 408, 128>}, {transform_indices = @transform_2, window_bounds = array<i64: 8, 128>}]} {
    %c0 = arith.constant 0 : index
    %c0_0 = arith.constant 0 : index
    %0 = vector.load %arg1[%c0, %c0_0] : memref<8x128xf32, #tpu.memory_space<vmem>>, vector<8x128xf32>
    %c0_1 = arith.constant 0 : index
    %c0_2 = arith.constant 0 : index
    %1 = vector.load %arg2[%c0_1, %c0_2] : memref<408x128xf32, #tpu.memory_space<vmem>>, vector<128x128xf32>
    %c128 = arith.constant 128 : index
    %c0_3 = arith.constant 0 : index
    %2 = vector.load %arg2[%c128, %c0_3] : memref<408x128xf32, #tpu.memory_space<vmem>>, vector<1x128xf32>
    %c136 = arith.constant 136 : index
    %c0_4 = arith.constant 0 : index
    %3 = vector.load %arg2[%c136, %c0_4] : memref<408x128xf32, #tpu.memory_space<vmem>>, vector<128x128xf32>
    %c264 = arith.constant 264 : index
    %c0_5 = arith.constant 0 : index
    %4 = vector.load %arg2[%c264, %c0_5] : memref<408x128xf32, #tpu.memory_space<vmem>>, vector<1x128xf32>
    %c272 = arith.constant 272 : index
    %c0_6 = arith.constant 0 : index
    %5 = vector.load %arg2[%c272, %c0_6] : memref<408x128xf32, #tpu.memory_space<vmem>>, vector<128x128xf32>
    %c400 = arith.constant 400 : index
    %c0_7 = arith.constant 0 : index
    %6 = vector.load %arg2[%c400, %c0_7] : memref<408x128xf32, #tpu.memory_space<vmem>>, vector<1x128xf32>
    %cst = arith.constant dense<0.000000e+00> : vector<8x128xf32>
    %7 = tpu.matmul %0, %1, %cst {dimension_numbers = #tpu.dot_dimension_numbers<[1], [0], [0], [1], [0, 0, 1, 1], [], []>} : vector<8x128xf32>, vector<128x128xf32>, vector<8x128xf32> -> vector<8x128xf32>
    %8 = vector.broadcast %2 : vector<1x128xf32> to vector<8x128xf32>
    %9 = arith.addf %7, %8 : vector<8x128xf32>
    %cst_8 = arith.constant 0.000000e+00 : f32
    %10 = vector.broadcast %cst_8 : f32 to vector<8x128xf32>
    %11 = arith.maximumf %9, %10 : vector<8x128xf32>
    %cst_9 = arith.constant dense<0.000000e+00> : vector<8x128xf32>
    %12 = tpu.matmul %11, %3, %cst_9 {dimension_numbers = #tpu.dot_dimension_numbers<[1], [0], [0], [1], [0, 0, 1, 1], [], []>} : vector<8x128xf32>, vector<128x128xf32>, vector<8x128xf32> -> vector<8x128xf32>
    %13 = vector.broadcast %4 : vector<1x128xf32> to vector<8x128xf32>
    %14 = arith.addf %12, %13 : vector<8x128xf32>
    %cst_10 = arith.constant 0.000000e+00 : f32
    %15 = vector.broadcast %cst_10 : f32 to vector<8x128xf32>
    %16 = arith.maximumf %14, %15 : vector<8x128xf32>
    %cst_11 = arith.constant dense<0.000000e+00> : vector<8x128xf32>
    %17 = tpu.matmul %16, %5, %cst_11 {dimension_numbers = #tpu.dot_dimension_numbers<[1], [0], [0], [1], [0, 0, 1, 1], [], []>} : vector<8x128xf32>, vector<128x128xf32>, vector<8x128xf32> -> vector<8x128xf32>
    %18 = vector.broadcast %6 : vector<1x128xf32> to vector<8x128xf32>
    %19 = arith.addf %17, %18 : vector<8x128xf32>
    %c0_12 = arith.constant 0 : index
    %c0_13 = arith.constant 0 : index
    %20 = vector.load %arg3[%c0_12, %c0_13] : memref<8x128xf32, #tpu.memory_space<vmem>>, vector<8x128xf32>
    tpu.vector_store %arg3[%c0_12, %c0_13], %19 {strides = array<i32>} : memref<8x128xf32, #tpu.memory_space<vmem>>, vector<8x128xf32>,
    return
  }
  func.func @transform_0(%arg0: i32) -> (i32, i32) {
    %c0_i32 = arith.constant 0 : i32
    %c0_i32_0 = arith.constant 0 : i32
    return %arg0, %c0_i32 : i32, i32
  }
  func.func @transform_1(%arg0: i32) -> (i32, i32) {
    %c0_i32 = arith.constant 0 : i32
    %c0_i32_0 = arith.constant 0 : i32
    %c0_i32_1 = arith.constant 0 : i32
    return %c0_i32, %c0_i32_0 : i32, i32
  }
  func.func @transform_2(%arg0: i32) -> (i32, i32) {
    %c0_i32 = arith.constant 0 : i32
    %c0_i32_0 = arith.constant 0 : i32
    return %arg0, %c0_i32 : i32, i32
  }
}

</mosaic_0001>

<bundles_post_ra>
// kernel: mlp_classifier_forward.1
= control target key start
LH: loop header
LB: loop body
LE: loop exit
PB: predicated region body
PF: predicated region fallthrough
CT: control target
= control target key end

     0   :  { %7 = vsyncpa [#allocation3], 0  ;;  %s568_s9 = smov [#allocation2]   ;;  %s637_s0 = inlined_call_operand.vmem [shape: f32[8,128], index: 0, kind: input, shape index: {}]   ;;  %s638_s1 = inlined_call_operand.hbm [shape: f32[408,128], index: 1, kind: input, shape index: {}]   ;;  %s639_s2 = inlined_call_operand.vmem [shape: f32[8,128], index: 2, kind: output, shape index: {}]  }
   0x1   :  { %s15_s10 = sshll.u32 %s568_s9, 4  ;;  %s544_s13 = scalar_lea.hbm %s638_s1, 6528  ;;  %s16_s10 = int_to_ptr.vmem [resolvable:$true] %s15_s10 }
   0x2   :  { %p545_p0 = scmp.ne.s32.totalorder %s638_s1, %s544_s13  ;;  %p548_p1 = scmp.lt.u32.totalorder %s544_s13, %s638_s1 }
   0x4   :  { %p550_p2 = pnand %p548_p1, %p545_p0 }
   0x6   :  { %553 = shalt.err (!%p550_p2)
}
   0x7   :  { %s554_s18 = scalar_lea.vmem %s16_s10, 6528  ;;  %p559_p4 = scmp.lt.s32.totalorder %s16_s10, %s16_s10 }
   0x8   :  { %p555_p3 = scmp.ne.s32.totalorder %s16_s10, %s554_s18  ;;  %p560_p5 = scmp.lt.s32.totalorder %s554_s18, %s554_s18 }
   0xa   :  { %p561_p6 = por %p560_p5, %p559_p4 }
   0xc   :  { %p562_p7 = pnand %p561_p6, %p555_p3 }
   0xe   :  { %565 = shalt.err (!%p562_p7)
}
   0xf   :  { %s569_s19 = smov 128   ;;  %s570_s20 = smov 8  }
  0x10   :  { %21 = dma.hbm_to_vmem [thread:$0]  %s638_s1, 6528, %s16_s10, [#allocation3], %s569_s19, %s569_s19, %s570_s20  }
  0x11   :  { %566 = dma.done.wait [#allocation3], 6528  }
  0x12   :  { %567 = vsyncadd [#allocation3], 4294960768  ;;  %v571_v0 = vmov 0.0|0.0   ;;  %vm572_vm0 = vmmov 0   ;;  %v573_v1 = vmov 0.0   ;;  %v26_v2 = vld [vmem:[#allocation2] sm:$0xff] }
  0x13   :  { %466 = vmatprep.subr.bf16.mxu0 %v571_v0  ;;  %393 = vmatprep.mubr.msk.f32.mxu0 %vm572_vm0, %v573_v1  ;;  %v27_v3 = vld [vmem:[#allocation2 + $0x8] sm:$0xff]  ;;  %v28_v4 = vld [vmem:[#allocation2 + $0x10] sm:$0xff]  ;;  %v29_v6 = vld [vmem:[#allocation2 + $0x18] sm:$0xff] }
  0x14   :  { %490 = vmatprep.subr.bf16.mxu1 %v571_v0  ;;  %428 = vmatprep.mubr.msk.f32.mxu1 %vm572_vm0, %v573_v1  ;;  %v467_v5 = vpack.c.bf16 %v27_v3, %v26_v2  ;;  %v470_v7 = vpack.c.bf16 %v29_v6, %v28_v4  ;;  %v30_v8 = vld [vmem:[#allocation2 + $0x20] sm:$0xff]  ;;  %v31_v9 = vld [vmem:[#allocation2 + $0x28] sm:$0xff]  ;;  %v44_v11 = vld [vmem:[#allocation2 + $0x90] sm:$0xff] }
  0x15   :  { %v43_v10 = vld [vmem:[#allocation2 + $0x88] sm:$0xff]  ;;  %v45_v12 = vld [vmem:[#allocation2 + $0x98] sm:$0xff]  ;;  %v46_v13 = vld [vmem:[#allocation2 + $0xa0] sm:$0xff]  ;;  %v473_v14 = vpack.c.bf16 %v31_v9, %v30_v8 }
  0x16   :  { %468 = vmatpush3.bf16.msra.mxu0 %v467_v5  ;;  %v491_v15 = vpack.c.bf16 %v44_v11, %v43_v10  ;;  %v32_v16 = vld [vmem:[#allocation2 + $0x30] sm:$0xff]  ;;  %v33_v17 = vld [vmem:[#allocation2 + $0x38] sm:$0xff]  ;;  %v494_v18 = vpack.c.bf16 %v46_v13, %v45_v12  ;;  %v47_v19 = vld [vmem:[#allocation2 + $0xa8] sm:$0xff] }
  0x17   :  { %469 = vmatprep.subr.bf16.mxu0 %v571_v0  ;;  %v48_v20 = vld [vmem:[#allocation2 + $0xb0] sm:$0xff]  ;;  %v476_v21 = vpack.c.bf16 %v33_v17, %v32_v16  ;;  %v34_v22 = vld [vmem:[#allocation2 + $0x40] sm:$0xff]  ;;  %v35_v23 = vld [vmem:[#allocation2 + $0x48] sm:$0xff] }
  0x18   :  { %492 = vmatpush3.bf16.msra.mxu1 %v491_v15  ;;  %v497_v24 = vpack.c.bf16 %v48_v20, %v47_v19  ;;  %v49_v25 = vld [vmem:[#allocation2 + $0xb8] sm:$0xff]  ;;  %v50_v26 = vld [vmem:[#allocation2 + $0xc0] sm:$0xff]  ;;  %v479_v27 = vpack.c.bf16 %v35_v23, %v34_v22  ;;  %v36_v28 = vld [vmem:[#allocation2 + $0x50] sm:$0xff] }
  0x19   :  { %493 = vmatprep.subr.bf16.mxu1 %v571_v0  ;;  %v37_v29 = vld [vmem:[#allocation2 + $0x58] sm:$0xff]  ;;  %v500_v30 = vpack.c.bf16 %v50_v26, %v49_v25  ;;  %v51_v31 = vld [vmem:[#allocation2 + $0xc8] sm:$0xff]  ;;  %v52_v32 = vld [vmem:[#allocation2 + $0xd0] sm:$0xff] }
  0x1a   :  { %471 = vmatpush3.bf16.msra.mxu0 %v470_v7  ;;  %v482_v33 = vpack.c.bf16 %v37_v29, %v36_v28  ;;  %v38_v34 = vld [vmem:[#allocation2 + $0x60] sm:$0xff]  ;;  %v39_v35 = vld [vmem:[#allocation2 + $0x68] sm:$0xff]  ;;  %v503_v36 = vpack.c.bf16 %v52_v32, %v51_v31  ;;  %v53_v37 = vld [vmem:[#allocation2 + $0xd8] sm:$0xff] }
  0x1b   :  { %472 = vmatprep.subr.bf16.mxu0 %v571_v0  ;;  %v54_v38 = vld [vmem:[#allocation2 + $0xe0] sm:$0xff]  ;;  %v485_v39 = vpack.c.bf16 %v39_v35, %v38_v34  ;;  %v40_v40 = vld [vmem:[#allocation2 + $0x70] sm:$0xff]  ;;  %v41_v41 = vld [vmem:[#allocation2 + $0x78] sm:$0xff] }
  0x1c   :  { %495 = vmatpush3.bf16.msra.mxu1 %v494_v18  ;;  %v506_v42 = vpack.c.bf16 %v54_v38, %v53_v37  ;;  %v55_v43 = vld [vmem:[#allocation2 + $0xe8] sm:$0xff]  ;;  %v56_v44 = vld [vmem:[#allocation2 + $0xf0] sm:$0xff]  ;;  %v488_v45 = vpack.c.bf16 %v41_v41, %v40_v40  ;;  %v25_v47 = vld [vmem:[%s637_s0] sm:$0xff] }
  0x1d   :  { %496 = vmatprep.subr.bf16.mxu1 %v571_v0  ;;  %v509_v46 = vpack.c.bf16 %v56_v44, %v55_v43  ;;  %v57_v48 = vld [vmem:[#allocation2 + $0xf8] sm:$0xff]  ;;  %v58_v49 = vld [vmem:[#allocation2 + $0x100] sm:$0xff]  ;;  %v60_v51 = vld [vmem:[#allocation2 + $0x110] sm:$0xff] }
  0x1e   :  { %474 = vmatpush3.bf16.msra.mxu0 %v473_v14  ;;  %v512_v50 = vpack.c.bf16 %v58_v49, %v57_v48  ;;  %v61_v52 = vld [vmem:[#allocation2 + $0x118] sm:$0xff]  ;;  %v62_v53 = vld [vmem:[#allocation2 + $0x120] sm:$0xff]  ;;  %v63_v55 = vld [vmem:[#allocation2 + $0x128] sm:$0xff] }
  0x1f   :  { %475 = vmatprep.subr.bf16.mxu0 %v571_v0  ;;  %v515_v54 = vpack.c.bf16 %v61_v52, %v60_v51  ;;  %v518_v56 = vpack.c.bf16 %v63_v55, %v62_v53  ;;  %v64_v57 = vld [vmem:[#allocation2 + $0x130] sm:$0xff]  ;;  %v65_v58 = vld [vmem:[#allocation2 + $0x138] sm:$0xff]  ;;  %v66_v60 = vld [vmem:[#allocation2 + $0x140] sm:$0xff] }
  0x20   :  { %498 = vmatpush3.bf16.msra.mxu1 %v497_v24  ;;  %v521_v59 = vpack.c.bf16 %v65_v58, %v64_v57  ;;  %v67_v61 = vld [vmem:[#allocation2 + $0x148] sm:$0xff]  ;;  %v68_v63 = vld [vmem:[#allocation2 + $0x150] sm:$0xff]  ;;  %v70_v3 = vld [vmem:[#allocation2 + $0x160] sm:$0xff] }
  0x21   :  { %499 = vmatprep.subr.bf16.mxu1 %v571_v0  ;;  %v524_v62 = vpack.c.bf16 %v67_v61, %v66_v60  ;;  %v71_v4 = vld [vmem:[#allocation2 + $0x168] sm:$0xff]  ;;  %v72_v6 = vld [vmem:[#allocation2 + $0x170] sm:$0xff]  ;;  %v73_v7 = vld [vmem:[#allocation2 + $0x178] sm:$0xff] }
  0x22   :  { %477 = vmatpush3.bf16.msra.mxu0 %v476_v21  ;;  %v530_v5 = vpack.c.bf16 %v71_v4, %v70_v3  ;;  %v533_v8 = vpack.c.bf16 %v73_v7, %v72_v6  ;;  %v307_v9 = vld [vmem:[#allocation2 + $0x80] ss:$0 sm:$0xff]  ;;  %v75_v15 = vld [vmem:[#allocation2 + $0x188] sm:$0xff]  ;;  %v309_v22 = vld [vmem:[#allocation2 + $0x190] ss:$0 sm:$0xff] }
  0x23   :  { %478 = vmatprep.subr.bf16.mxu0 %v571_v0  ;;  %v74_v14 = vld [vmem:[#allocation2 + $0x180] sm:$0xff]  ;;  %v308_v17 = vld [vmem:[#allocation2 + $0x108] ss:$0 sm:$0xff] }
  0x24   :  { %501 = vmatpush3.bf16.msra.mxu1 %v500_v30  ;;  %v536_v16 = vpack.c.bf16 %v75_v15, %v74_v14 }
  0x25   :  { %502 = vmatprep.subr.bf16.mxu1 %v571_v0 }
  0x26   :  { %480 = vmatpush3.bf16.msra.mxu0 %v479_v27 }
  0x27   :  { %481 = vmatprep.subr.bf16.mxu0 %v571_v0 }
  0x28   :  { %504 = vmatpush3.bf16.msra.mxu1 %v503_v36 }
  0x29   :  { %505 = vmatprep.subr.bf16.mxu1 %v571_v0 }
  0x2a   :  { %483 = vmatpush3.bf16.msra.mxu0 %v482_v33 }
  0x2b   :  { %484 = vmatprep.subr.bf16.mxu0 %v571_v0 }
  0x2c   :  { %507 = vmatpush3.bf16.msra.mxu1 %v506_v42 }
  0x2d   :  { %508 = vmatprep.subr.bf16.mxu1 %v571_v0 }
  0x2e   :  { %486 = vmatpush3.bf16.msra.mxu0 %v485_v39 }
  0x2f   :  { %487 = vmatprep.subr.bf16.mxu0 %v571_v0 }
  0x30   :  { %510 = vmatpush3.bf16.msra.mxu1 %v509_v46 }
  0x31   :  { %511 = vmatprep.subr.bf16.mxu1 %v571_v0 }
  0x32   :  { %489 = vmatpush3.bf16.msra.mxu0 %v488_v45 }
  0x33   :  { %514 = vmatprep.subr.bf16.mxu0 %v571_v0 }
  0x34   :  { %513 = vmatpush3.bf16.msra.mxu1 %v512_v50 }
  0x35   :  { %394 = vmatmul.mubr.f32.vlgmr.msra.gmra.mrb[0].mxu0 %v25_v47 }
  0x36   :  { %463 = vmatprep.mubr.msk.f32.mxu0 %vm572_vm0, %v573_v1  ;;  %516 = vmatpush3.bf16.msra.mxu0 %v515_v54  ;;  %v69_v1 = vld [vmem:[#allocation2 + $0x158] sm:$0xff] }
  0x37   :  { %517 = vmatprep.subr.bf16.mxu0 %v571_v0  ;;  %v527_v2 = vpack.c.bf16 %v69_v1, %v68_v63 }
  0x3a   :  { %519 = vmatpush3.bf16.msra.mxu0 %v518_v56 }
  0x3b   :  { %520 = vmatprep.subr.bf16.mxu0 %v571_v0 }
  0x3e   :  { %522 = vmatpush3.bf16.msra.mxu0 %v521_v59 }
  0x3f   :  { %523 = vmatprep.subr.bf16.mxu0 %v571_v0 }
  0x42   :  { %525 = vmatpush3.bf16.msra.mxu0 %v524_v62 }
  0x43   :  { %526 = vmatprep.subr.bf16.mxu0 %v571_v0 }
  0x46   :  { %528 = vmatpush3.bf16.msra.mxu0 %v527_v2 }
  0x47   :  { %529 = vmatprep.subr.bf16.mxu0 %v571_v0 }
  0x4a   :  { %531 = vmatpush3.bf16.msra.mxu0 %v530_v5 }
  0x4b   :  { %532 = vmatprep.subr.bf16.mxu0 %v571_v0 }
  0x4e   :  { %534 = vmatpush3.bf16.msra.mxu0 %v533_v8 }
  0x4f   :  { %535 = vmatprep.subr.bf16.mxu0 %v571_v0 }
  0x52   :  { %537 = vmatpush3.bf16.msra.mxu0 %v536_v16 }
 0x108   :  { %v147_v10 = vpop.f32.mrb[0].mxu0 }
 0x109   :  { %v148_v11 = vadd.f32 %v307_v9, %v147_v10  ;;  %v395_v12 = vpop.f32.mrb[1].mxu0 }
 0x10b   :  { %v151_v13 = vmax.f32 %v148_v11, 0.0 }
 0x10d   :  { %429 = vmatmul.mubr.f32.vlgmr.msra.gmra.mrb[0].mxu1 %v151_v13 }
 0x1e0   :  { %v222_v18 = vpop.f32.mrb[0].mxu1 }
 0x1e1   :  { %v223_v19 = vadd.f32 %v308_v17, %v222_v18  ;;  %v430_v20 = vpop.f32.mrb[1].mxu1 }
 0x1e3   :  { %v226_v21 = vmax.f32 %v223_v19, 0.0 }
 0x1e5   :  { %464 = vmatmul.mubr.f32.vlgmr.msra.gmra.mrb[2].mxu0 %v226_v21 }
 0x2b8   :  { %v297_v23 = vpop.f32.mrb[2].mxu0 }
 0x2b9   :  { %v298_v24 = vadd.f32 %v309_v22, %v297_v23  ;;  %v465_v0 = vpop.f32.mrb[3].mxu0 }
 0x2bb   :  { %301 = vst [vmem:[%s639_s2] sm:$0xff] %v298_v24 }
 0x2bc   :  { %306 = vsyncpa [#allocation3], 1 }

</bundles_post_ra>
